<compile_context>
chip_gen: v6e
topology: v6e:2x2x1
jax: 0.10.0
libtpu: 0.0.40
codegen_flags: <defaults>
</compile_context>

<pallas_src>
import jax
import jax.numpy as jnp
from jax import lax
from jax.experimental import pallas as pl
from jax.experimental.pallas import tpu as pltpu


def _onehot_kernel(ids_ref, table_ref, out_ref):
    """Exact one-hot MXU gather: onehot(ids) @ table. For tiny vocabularies only."""
    tm = out_ref.shape[0]
    start = pl.multiple_of(pl.program_id(0) * tm, tm)
    ids = ids_ref[pl.ds(start, tm), :]                      # (tm, 1) int32
    v = table_ref.shape[0]
    col = lax.broadcasted_iota(jnp.int32, (tm, v), 1)       # (tm, V)
    onehot = (col == ids).astype(table_ref.dtype)
    # precision=HIGHEST keeps the f32 lookup exact on the bf16-native MXU (v6e/v7x).
    out_ref[...] = jnp.dot(
        onehot,
        table_ref[...],
        preferred_element_type=jnp.float32,
        precision=lax.Precision.HIGHEST,
    ).astype(out_ref.dtype)


def _take_kernel(ids_ref, table_ref, out_ref):
    """Row-gather from the VMEM-resident table (no one-hot FLOPs, no (Tm,V) temp)."""
    tm = out_ref.shape[0]
    start = pl.multiple_of(pl.program_id(0) * tm, tm)
    ids = ids_ref[pl.ds(start, tm), :][:, 0]                # (tm,) int32
    out_ref[...] = jnp.take(table_ref[...], ids, axis=0).astype(out_ref.dtype)


def _resident_spec(block_shape):
    """Constant-index-map BlockSpec; single-buffered when the jax version supports it."""
    index_map = lambda i: (0, 0)
    if hasattr(pl, "Buffered"):
        try:
            return pl.BlockSpec(block_shape, index_map, pipeline_mode=pl.Buffered(1))
        except TypeError:
            pass
    return pl.BlockSpec(block_shape, index_map)


def _compiler_params(**kwargs):
    cls = getattr(pltpu, "CompilerParams", None) or getattr(pltpu, "TPUCompilerParams")
    return cls(**kwargs)


def _vmem_budget_bytes():
    try:
        phys = int(pltpu.get_tpu_info().vmem_capacity_bytes)
    except Exception:
        phys = 64 << 20          # conservative: v7x has 64 MiB per TensorCore
    return (phys * 3) // 4       # headroom for compiler-internal scratch


def embeddings_forward(token_ids, embed_table, *, block_tokens=512, onehot_max_vocab=1024):
    """nn.Embedding lookup.  token_ids: (B, S) int, embed_table: (V, D) -> (B, S, D)."""
    B, S = token_ids.shape
    V, D = embed_table.shape
    N = B * S
    itemsize = jnp.dtype(embed_table.dtype).itemsize

    # One-hot/MXU path only for tiny vocab; crossover is even lower on v5e's weaker MXU.
    use_onehot = V <= onehot_max_vocab
    table_bytes = V * D * itemsize
    budget = _vmem_budget_bytes()

    def footprint(tm_):
        n_pad_ = pl.cdiv(N, tm_) * tm_
        ids_bytes = n_pad_ * 128 * 4                  # (n_pad, 1) int32 pads to 128 lanes
        out_bytes = 2 * tm_ * D * itemsize            # double-buffered output tile
        work = tm_ * V * 4 if use_onehot else tm_ * D * 4
        return table_bytes + ids_bytes + out_bytes + work

    # Largest token tile that (a) is not wastefully bigger than the problem and
    # (b) fits the VMEM budget; never below one (8,128)-friendly 128-row tile.
    tm = int(min(block_tokens, max(128, pl.cdiv(N, 128) * 128)))
    while tm > 128 and footprint(tm) > budget:
        tm //= 2
    tm = max(tm, 128)
    n_pad = pl.cdiv(N, tm) * tm
    # TODO(synk): if footprint(128) > budget the table itself does not fit VMEM; an
    # HBM-resident DMA row-gather fallback is needed (not implemented).

    # Clamp ids (no OOB gather possible) and pad the token axis to a tile multiple.
    flat_ids = jnp.clip(token_ids.reshape(N).astype(jnp.int32), 0, V - 1)
    flat_ids = jnp.pad(flat_ids, (0, n_pad - N)).reshape(n_pad, 1)

    # Always set the scoped-VMEM limit (v5e default is only 16 MiB); never past physical.
    vmem_limit = int(min(budget, max(2 * footprint(tm), 32 << 20)))

    kernel = _onehot_kernel if use_onehot else _take_kernel

    out = pl.pallas_call(
        kernel,
        out_shape=jax.ShapeDtypeStruct((n_pad, D), embed_table.dtype),
        grid_spec=pltpu.PrefetchScalarGridSpec(
            num_scalar_prefetch=0,
            grid=(n_pad // tm,),
            in_specs=[
                _resident_spec((n_pad, 1)),   # all token ids: VMEM-resident, 1 DMA total
                _resident_spec((V, D)),       # unpadded table: VMEM-resident, 1 DMA total
            ],
            out_specs=pl.BlockSpec((tm, D), lambda i: (i, 0)),
        ),
        compiler_params=_compiler_params(
            dimension_semantics=("parallel",),
            vmem_limit_bytes=vmem_limit,
        ),
    )(flat_ids, embed_table)

    return out[:N].reshape(B, S, D)


if __name__ == "__main__":
    # Small deterministic setup consistent with the module's __init__:
    #   vocab of length V, embedding table (V, d_model), float32 parameters.
    key = jax.random.PRNGKey(0)
    k_emb, k_ids = jax.random.split(key)

    vocab_size = 64          # len(vocab)
    d_model = 128            # hidden size (lane-dense: multiple of 128)
    batch, seq = 2, 8

    # Deterministic parameter init (stand-in for nn.Embedding's N(0,1) init).
    embed_table = jax.random.normal(k_emb, (vocab_size, d_model), dtype=jnp.float32)

    # Integer token ids, as nn.Embedding expects.
    token_ids = jax.random.randint(k_ids, (batch, seq), 0, vocab_size, dtype=jnp.int32)

    out = embeddings_forward(token_ids, embed_table)
    out = jax.block_until_ready(out)

    # Correctness check against the pure-JAX reference gather.
    ref = embed_table[token_ids.reshape(-1)].reshape(batch, seq, d_model)
    assert out.shape == (batch, seq, d_model)
    assert out.dtype == jnp.float32
    assert jnp.allclose(out, ref, rtol=1e-6, atol=1e-6), "mismatch vs reference lookup"

    print("KERNEL_OK")
</pallas_src>

<mosaic_0001>
module attributes {stable_mosaic.version = 11 : i64} {
  func.func @_onehot_kernel(%arg0: i32, %arg1: memref<128x1xi32, #tpu.memory_space<vmem>>, %arg2: memref<64x128xf32, #tpu.memory_space<vmem>>, %arg3: memref<128x128xf32, #tpu.memory_space<vmem>>) attributes {dimension_semantics = [#tpu.dimension_semantics<parallel>], iteration_bounds = array<i64: 1>, scalar_prefetch = 0 : i64, scratch_operands = 0 : i64, tpu.core_type = #tpu.core_type<tc>, window_params = [{pipeline_mode = #tpu.pipeline_mode<synchronous>, transform_indices = @transform_0, window_bounds = array<i64: 128, 1>}, {pipeline_mode = #tpu.pipeline_mode<synchronous>, transform_indices = @transform_1, window_bounds = array<i64: 64, 128>}, {transform_indices = @transform_2, window_bounds = array<i64: 128, 128>}]} {
    %c128_i32 = arith.constant 128 : i32
    %0 = arith.muli %arg0, %c128_i32 : i32
    %1 = tpu.assume_multiple %0, 128 : i32
    %2 = arith.index_cast %1 : i32 to index
    %c0 = arith.constant 0 : index
    %3 = vector.load %arg1[%2, %c0] : memref<128x1xi32, #tpu.memory_space<vmem>>, vector<128x1xi32>
    %4 = tpu.iota {dimensions = array<i32: 1>} : vector<128x64xi32>
    %5 = vector.broadcast %3 : vector<128x1xi32> to vector<128x64xi32>
    %6 = arith.cmpi eq, %4, %5 : vector<128x64xi32>
    %7 = arith.extui %6 : vector<128x64xi1> to vector<128x64xi32>
    %8 = arith.sitofp %7 : vector<128x64xi32> to vector<128x64xf32>
    %c0_0 = arith.constant 0 : index
    %c0_1 = arith.constant 0 : index
    %9 = vector.load %arg2[%c0_0, %c0_1] : memref<64x128xf32, #tpu.memory_space<vmem>>, vector<64x128xf32>
    %cst = arith.constant dense<0.000000e+00> : vector<128x128xf32>
    %10 = tpu.matmul %8, %9, %cst {dimension_numbers = #tpu.dot_dimension_numbers<[1], [0], [0], [1], [0, 0, 1, 1], [], []>, precision = #tpu.contract_precision<fp32>} : vector<128x64xf32>, vector<64x128xf32>, vector<128x128xf32> -> vector<128x128xf32>
    %c0_2 = arith.constant 0 : index
    %c0_3 = arith.constant 0 : index
    %11 = vector.load %arg3[%c0_2, %c0_3] : memref<128x128xf32, #tpu.memory_space<vmem>>, vector<128x128xf32>
    tpu.vector_store %arg3[%c0_2, %c0_3], %10 {strides = array<i32>} : memref<128x128xf32, #tpu.memory_space<vmem>>, vector<128x128xf32>,
    return
  }
  func.func @transform_0(%arg0: i32) -> (i32, i32) {
    %c0_i32 = arith.constant 0 : i32
    %c0_i32_0 = arith.constant 0 : i32
    %c0_i32_1 = arith.constant 0 : i32
    return %c0_i32, %c0_i32_0 : i32, i32
  }
  func.func @transform_1(%arg0: i32) -> (i32, i32) {
    %c0_i32 = arith.constant 0 : i32
    %c0_i32_0 = arith.constant 0 : i32
    %c0_i32_1 = arith.constant 0 : i32
    return %c0_i32, %c0_i32_0 : i32, i32
  }
  func.func @transform_2(%arg0: i32) -> (i32, i32) {
    %c0_i32 = arith.constant 0 : i32
    %c0_i32_0 = arith.constant 0 : i32
    return %arg0, %c0_i32 : i32, i32
  }
}

</mosaic_0001>

<bundles_post_ra>
// kernel: tpu_custom_call.1
= control target key start
LH: loop header
LB: loop body
LE: loop exit
PB: predicated region body
PF: predicated region fallthrough
CT: control target
= control target key end

     0   :  { %v1876_v2 = vmov 0   ;;  %s2610_s0 = inlined_call_operand.vmem [shape: s32[128,1], index: 0, kind: input, shape index: {}]   ;;  %s2611_s1 = inlined_call_operand.vmem [shape: f32[64,128], index: 1, kind: input, shape index: {}]   ;;  %s2612_s2 = inlined_call_operand.hbm [shape: f32[128,128], index: 2, kind: output, shape index: {}]  }
   0x1   :  { %v16_v0 = vld [vmem:[%s2610_s0 + $0x10] sm:$0xff]  ;;  %v14_v1 = vld [vmem:[%s2610_s0] sm:$0xff]  ;;  %1853 = vset.pattern.permute.xlu1 %v1876_v2  ;;  %1852 = vset.pattern.permute.xlu0 %v1876_v2  ;;  %v17_v3 = vld [vmem:[%s2610_s0 + $0x18] sm:$0xff] }
   0x2   :  { %39 = vperm.xlu1 %1853, %v16_v0   ;;  %33 = vperm.xlu0 %1852, %v14_v1   ;;  %v15_v4 = vld [vmem:[%s2610_s0 + $0x8] sm:$0xff]  ;;  %v135_v5 = vld [vmem:[%s2611_s1 + $0x38] sm:$0xff]  ;;  %v134_v6 = vld [vmem:[%s2611_s1 + $0x30] sm:$0xff] }
   0x3   :  { %v1914_v7 = vand.u32 4294901760, %v135_v5  ;;  %v1916_v8 = vand.u32 4294901760, %v134_v6  ;;  %v133_v9 = vld [vmem:[%s2611_s1 + $0x28] sm:$0xff]  ;;  %v132_v10 = vld [vmem:[%s2611_s1 + $0x20] sm:$0xff]  ;;  %v131_v11 = vld [vmem:[%s2611_s1 + $0x18] sm:$0xff] }
   0x4   :  { %v19_v12 = vld [vmem:[%s2610_s0 + $0x28] sm:$0xff]  ;;  %v18_v13 = vld [vmem:[%s2610_s0 + $0x20] sm:$0xff]  ;;  %v1933_v14 = vand.u32 4294901760, %v133_v9  ;;  %v1935_v15 = vand.u32 4294901760, %v132_v10  ;;  %v1937_v16 = vand.u32 4294901760, %v131_v11  ;;  %v130_v17 = vld [vmem:[%s2611_s1 + $0x10] sm:$0xff] }
   0x5   :  { %v1943_v18 = vsub.f32 %v135_v5, %v1914_v7  ;;  %v1946_v19 = vsub.f32 %v134_v6, %v1916_v8  ;;  %1607 = vmatprep.subr.mxu0 %v1914_v7 }
   0x6   :  { %42 = vperm.xlu1 %1853, %v17_v3   ;;  %36 = vperm.xlu0 %1852, %v15_v4  }
   0x7   :  { %7 = vsyncpa [#allocation3], 0  ;;  %v1950_v20 = vsub.f32 %v133_v9, %v1933_v14  ;;  %v1953_v21 = vsub.f32 %v132_v10, %v1935_v15  ;;  %1608 = vmatpush3.msra.mxu0 %v1914_v7  ;;  %v1956_v22 = vand.u32 4294901760, %v130_v17  ;;  %v129_v23 = vld [vmem:[%s2611_s1 + $0x8] sm:$0xff]  ;;  %v1962_v24 = vand.u32 4294901760, %v1943_v18  ;;  %v21_v26 = vld [vmem:[%s2610_s0 + $0x38] sm:$0xff] }
   0x8   :  { %v1965_v25 = vand.u32 4294901760, %v1946_v19  ;;  %v20_v27 = vld [vmem:[%s2610_s0 + $0x30] sm:$0xff]  ;;  %v1977_v29 = vsub.f32 %v131_v11, %v1937_v16  ;;  %1609 = vmatprep.subr.mxu0 %v1916_v8  ;;  %v128_v30 = vld [vmem:[%s2611_s1] sm:$0xff]  ;;  %v1991_v34 = vand.u32 4294901760, %v129_v23  ;;  %v23_v39 = vld [vmem:[%s2610_s0 + $0x48] sm:$0xff]  ;;  %v30_v1 = vlaneseq }
   0x9   :  { %v1974_v28 = vand.u32 4294901760, %v1950_v20  ;;  %v438_v31 = vsub.f32 %v1943_v18, %v1962_v24  ;;  %v1988_v33 = vand.u32 4294901760, %v1953_v21  ;;  %1610 = vmatpush3.msra.mxu0 %v1916_v8  ;;  %v1996_v36 = vsub.f32 %v130_v17, %v1956_v22  ;;  %v22_v40 = vld [vmem:[%s2610_s0 + $0x40] sm:$0xff]  ;;  %v25_v48 = vld [vmem:[%s2610_s0 + $0x58] sm:$0xff]  ;;  %v24_v49 = vld [vmem:[%s2610_s0 + $0x50] sm:$0xff] }
   0xa   :  { %48 = vperm.xlu1 %1853, %v19_v12   ;;  %45 = vperm.xlu0 %1852, %v18_v13   ;;  %v445_v32 = vsub.f32 %v1946_v19, %v1965_v25  ;;  %v1999_v38 = vand.u32 4294901760, %v128_v30  ;;  %v2008_v42 = vand.u32 4294901760, %v1977_v29  ;;  %v2014_v44 = vsub.f32 %v129_v23, %v1991_v34  ;;  %v27_v55 = vld [vmem:[%s2610_s0 + $0x68] sm:$0xff]  ;;  %v26_v56 = vld [vmem:[%s2610_s0 + $0x60] sm:$0xff]  ;;  %v29_v61 = vld [vmem:[%s2610_s0 + $0x78] sm:$0xff] }
   0xb   :  { %v452_v35 = vsub.f32 %v1950_v20, %v1974_v28  ;;  %1611 = vmatprep.subr.mxu0 %v1933_v14  ;;  %v439_v37 = vand.u32 4294901760, %v438_v31  ;;  %v459_v43 = vsub.f32 %v1953_v21, %v1988_v33  ;;  %v2018_v46 = vand.u32 4294901760, %v1996_v36  ;;  %v28_v62 = vld [vmem:[%s2610_s0 + $0x70] sm:$0xff]  ;;  %s1878_s0 = smov [#allocation2]  }
   0xc   :  { %v446_v41 = vand.u32 4294901760, %v445_v32  ;;  %1612 = vmatpush3.msra.mxu0 %v1933_v14  ;;  %v2022_v47 = vsub.f32 %v128_v30, %v1999_v38  ;;  %v466_v50 = vsub.f32 %v1977_v29, %v2008_v42  ;;  %v2034_v52 = vand.u32 4294901760, %v2014_v44  ;;  %s1388_s28 = sshll.u32 %s1878_s0, 4  ;;  %s1389_s28 = int_to_ptr.vmem [resolvable:$true] %s1388_s28 }
   0xd   :  { %1647 = vmatprep.subr.mxu1 %v439_v37  ;;  %1613 = vmatprep.subr.mxu0 %v1935_v15  ;;  %v453_v45 = vand.u32 4294901760, %v452_v35  ;;  %v460_v51 = vand.u32 4294901760, %v459_v43  ;;  %v473_v53 = vsub.f32 %v1996_v36, %v2018_v46  ;;  %v2066_v2 = vand.u32 127, %v30_v1  ;;  %s1854_s29 = scalar_lea.vmem %s1389_s28, 2048  ;;  %p1859_p1 = scmp.lt.s32.totalorder %s1389_s28, %s1389_s28 }
   0xe   :  { %54 = vperm.xlu1 %1853, %v21_v26   ;;  %51 = vperm.xlu0 %1852, %v20_v27   ;;  %v2041_v54 = vand.u32 4294901760, %v2022_v47  ;;  %v467_v57 = vand.u32 4294901760, %v466_v50  ;;  %v480_v58 = vsub.f32 %v2014_v44, %v2034_v52  ;;  %vm136_vm0 = vcmask 523264   ;;  %p1855_p0 = scmp.ne.s32.totalorder %s1389_s28, %s1854_s29  ;;  %p1860_p2 = scmp.lt.s32.totalorder %s1854_s29, %s1854_s29 }
   0xf   :  { %1648 = vmatpush3.msra.mxu1 %v439_v37  ;;  %1614 = vmatpush3.msra.mxu0 %v1935_v15  ;;  %v474_v59 = vand.u32 4294901760, %v473_v53  ;;  %v1877_v5 = vmov 0.0  }
  0x10   :  { %1649 = vmatprep.subr.mxu1 %v446_v41  ;;  %1615 = vmatprep.subr.mxu0 %v1937_v16  ;;  %v487_v60 = vsub.f32 %v2022_v47, %v2041_v54  ;;  %v481_v63 = vand.u32 4294901760, %v480_v58  ;;  %p1861_p3 = por %p1860_p2, %p1859_p1 }
  0x11   :  { %1650 = vmatpush3.msra.mxu1 %v446_v41  ;;  %1616 = vmatpush3.msra.mxu0 %v1937_v16 }
  0x12   :  { %60 = vperm.xlu1 %1853, %v23_v39   ;;  %57 = vperm.xlu0 %1852, %v22_v40   ;;  %v488_v0 = vand.u32 4294901760, %v487_v60  ;;  %p1862_p4 = pnand %p1861_p3, %p1855_p0 }
  0x13   :  { %1651 = vmatprep.subr.mxu1 %v453_v45  ;;  %1617 = vmatprep.subr.mxu0 %v1956_v22 }
  0x14   :  { %1652 = vmatpush3.msra.mxu1 %v453_v45  ;;  %1618 = vmatpush3.msra.mxu0 %v1956_v22 }
  0x15   :  { %1653 = vmatprep.subr.mxu1 %v460_v51  ;;  %1619 = vmatprep.subr.mxu0 %v1991_v34 }
  0x16   :  { %66 = vperm.xlu1 %1853, %v25_v48   ;;  %63 = vperm.xlu0 %1852, %v24_v49  }
  0x17   :  { %1654 = vmatpush3.msra.mxu1 %v460_v51  ;;  %1620 = vmatpush3.msra.mxu0 %v1991_v34 }
  0x18   :  { %1655 = vmatprep.subr.mxu1 %v467_v57  ;;  %1621 = vmatprep.subr.mxu0 %v1999_v38 }
  0x19   :  { %1656 = vmatpush3.msra.mxu1 %v467_v57  ;;  %1622 = vmatpush3.msra.mxu0 %v1999_v38 }
  0x1a   :  { %72 = vperm.xlu1 %1853, %v27_v55   ;;  %69 = vperm.xlu0 %1852, %v26_v56  }
  0x1b   :  { %1657 = vmatprep.subr.mxu1 %v474_v59  ;;  %1687 = vmatprep.subr.mxu0 %v1943_v18 }
  0x1c   :  { %1658 = vmatpush3.msra.mxu1 %v474_v59 }
  0x1d   :  { %1659 = vmatprep.subr.mxu1 %v481_v63 }
  0x1e   :  { %78 = vperm.xlu1 %1853, %v29_v61   ;;  %75 = vperm.xlu0 %1852, %v28_v62  }
  0x1f   :  { %1660 = vmatpush3.msra.mxu1 %v481_v63 }
  0x20   :  { %1661 = vmatprep.subr.mxu1 %v488_v0 }
  0x21   :  { %1662 = vmatpush3.msra.mxu1 %v488_v0 }
  0x22   :  { %1727 = vmatprep.subr.mxu1 %v1914_v7 }
  0x7d   :  { %v40_v3 = vpop.permute.xlu1 %39  ;;  %v34_v4 = vpop.permute.xlu0 %33 }
  0x7e   :  { %vm82_vm1 = vcmp.eq.s32.totalorder %v2066_v2, %v40_v3  ;;  %vm80_vm2 = vcmp.eq.s32.totalorder %v2066_v2, %v34_v4 }
  0x7f   :  { %v2071_v6 = vsel %vm82_vm1, 1.0, %v1877_v5  ;;  %v2074_v9 = vsel %vm80_vm2, 1.0, %v1877_v5 }
  0x80   :  { %v144_v10 = vsel %vm136_vm0, %v2071_v6, 0  ;;  %1663 = vmatprep.mubr.msk.f32.mxu1 %vm136_vm0, %v2074_v9  ;;  %v138_v11 = vsel %vm136_vm0, %v2074_v9, 0 }
  0x81   :  { %v2082_v12 = vsub.f32 %v144_v10, %v144_v10  ;;  %v43_v13 = vpop.permute.xlu1 %42  ;;  %v37_v17 = vpop.permute.xlu0 %36  ;;  %v2084_v23 = vsub.f32 %v138_v11, %v138_v11 }
  0x82   :  { %vm83_vm3 = vcmp.eq.s32.totalorder %v2066_v2, %v43_v13  ;;  %vm81_vm4 = vcmp.eq.s32.totalorder %v2066_v2, %v37_v17 }
  0x83   :  { %v2089_v26 = vsel %vm83_vm3, 1.0, %v1877_v5  ;;  %v2092_v27 = vsel %vm81_vm4, 1.0, %v1877_v5  ;;  %v260_v30 = vand.u32 4294901760, %v2084_v23  ;;  %v280_v35 = vand.u32 4294901760, %v2082_v12 }
  0x84   :  { %v147_v31 = vsel %vm136_vm0, %v2089_v26, 0  ;;  %v141_v32 = vsel %vm136_vm0, %v2092_v27, 0  ;;  %1664 = vmatmul.mubr.msk.f32.vlgmr.msra.gmra.mxu1 %vm136_vm0, %v2092_v27 }
  0x85   :  { %v2102_v37 = vsub.f32 %v147_v31, %v147_v31  ;;  %v2104_v39 = vsub.f32 %v141_v32, %v141_v32  ;;  %v49_v40 = vpop.permute.xlu1 %48  ;;  %1666 = vmatprep.mubr.msk.f32.mxu1 %vm136_vm0, %v2071_v6  ;;  %v46_v41 = vpop.permute.xlu0 %45  ;;  %v261_v43 = vsub.f32 %v2084_v23, %v260_v30  ;;  %1728 = vmatpush3.msra.mxu1 %v1914_v7 }
  0x86   :  { %vm85_vm5 = vcmp.eq.s32.totalorder %v2066_v2, %v49_v40  ;;  %vm84_vm6 = vcmp.eq.s32.totalorder %v2066_v2, %v46_v41  ;;  %1729 = vmatprep.subr.mxu1 %v1916_v8  ;;  %v281_v55 = vsub.f32 %v2082_v12, %v280_v35 }
  0x87   :  { %v2115_v45 = vsel %vm85_vm5, 1.0, %v1877_v5  ;;  %v2118_v48 = vsel %vm84_vm6, 1.0, %v1877_v5  ;;  %v262_v49 = vand.u32 4294901760, %v261_v43  ;;  %v270_v50 = vand.u32 4294901760, %v2104_v39  ;;  %1730 = vmatpush3.msra.mxu1 %v1916_v8 }
  0x88   :  { %v153_v51 = vsel %vm136_vm0, %v2115_v45, 0  ;;  %v150_v53 = vsel %vm136_vm0, %v2118_v48, 0  ;;  %1667 = vmatmul.mubr.msk.f32.gmra.mxu1 %vm136_vm0, %v2089_v26  ;;  %v2619_v56 = vand.u32 4294901760, %v2102_v37  ;;  %1731 = vmatprep.subr.mxu1 %v1933_v14  ;;  %v282_v11 = vand.u32 4294901760, %v281_v55 }
  0x89   :  { %v2132_v57 = vsub.f32 %v153_v51, %v153_v51  ;;  %v2134_v58 = vsub.f32 %v150_v53, %v150_v53  ;;  %v55_v59 = vpop.permute.xlu1 %54  ;;  %1623 = vmatprep.mubr.f32.mxu0 %v262_v49  ;;  %1669 = vmatprep.mubr.msk.f32.mxu1 %vm136_vm0, %v2118_v48  ;;  %v52_v60 = vpop.permute.xlu0 %51  ;;  %v271_v61 = vsub.f32 %v2104_v39, %v270_v50 }
  0x8a   :  { %vm87_vm7 = vcmp.eq.s32.totalorder %v2066_v2, %v55_v59  ;;  %vm86_vm8 = vcmp.eq.s32.totalorder %v2066_v2, %v52_v60  ;;  %v291_v62 = vsub.f32 %v2102_v37, %v2619_v56  ;;  %1732 = vmatpush3.msra.mxu1 %v1933_v14 }
  0x8b   :  { %v2148_v63 = vsel %vm87_vm7, 1.0, %v1877_v5  ;;  %v2151_v0 = vsel %vm86_vm8, 1.0, %v1877_v5  ;;  %v272_v1 = vand.u32 4294901760, %v271_v61  ;;  %v2618_v3 = vand.u32 4294901760, %v2134_v58  ;;  %1733 = vmatprep.subr.mxu1 %v1935_v15 }
  0x8c   :  { %v159_v4 = vsel %vm136_vm0, %v2148_v63, 0  ;;  %v156_v10 = vsel %vm136_vm0, %v2151_v0, 0  ;;  %1670 = vmatmul.mubr.msk.f32.gmra.mxu1 %vm136_vm0, %v2115_v45  ;;  %v2615_v13 = vand.u32 4294901760, %v2132_v57  ;;  %v292_v43 = vand.u32 4294901760, %v291_v62 }
  0x8d   :  { %v2162_v17 = vsub.f32 %v159_v4, %v159_v4  ;;  %v2164_v31 = vsub.f32 %v156_v10, %v156_v10  ;;  %v61_v32 = vpop.permute.xlu1 %60  ;;  %1624 = vmatmul.mubr.f32.vlgmr.msra.gmra.mxu0 %v272_v1  ;;  %1672 = vmatprep.mubr.msk.f32.mxu1 %vm136_vm0, %v2151_v0  ;;  %v58_v40 = vpop.permute.xlu0 %57  ;;  %v301_v41 = vsub.f32 %v2134_v58, %v2618_v3 }
  0x8e   :  { %vm89_vm9 = vcmp.eq.s32.totalorder %v2066_v2, %v61_v32  ;;  %1688 = vmatpush3.msra.mxu0 %v1943_v18  ;;  %vm88_vm10 = vcmp.eq.s32.totalorder %v2066_v2, %v58_v40  ;;  %1626 = vmatprep.mubr.f32.mxu0 %v282_v11  ;;  %v311_v49 = vsub.f32 %v2132_v57, %v2615_v13 }
  0x8f   :  { %v2178_v51 = vsel %vm89_vm9, 1.0, %v1877_v5  ;;  %v2181_v53 = vsel %vm88_vm10, 1.0, %v1877_v5  ;;  %1689 = vmatprep.subr.mxu0 %v1946_v19  ;;  %v302_v55 = vand.u32 4294901760, %v301_v41  ;;  %v2614_v59 = vand.u32 4294901760, %v2164_v31  ;;  %1734 = vmatpush3.msra.mxu1 %v1935_v15 }
  0x90   :  { %v165_v18 = vsel %vm136_vm0, %v2178_v51, 0  ;;  %v162_v60 = vsel %vm136_vm0, %v2181_v53, 0  ;;  %1673 = vmatmul.mubr.msk.f32.gmra.mxu1 %vm136_vm0, %v2148_v63  ;;  %1690 = vmatpush3.msra.mxu0 %v1946_v19  ;;  %v2613_v61 = vand.u32 4294901760, %v2162_v17  ;;  %v312_v19 = vand.u32 4294901760, %v311_v49 }
  0x91   :  { %v2194_v62 = vsub.f32 %v165_v18, %v165_v18  ;;  %v2196_v1 = vsub.f32 %v162_v60, %v162_v60  ;;  %v67_v4 = vpop.permute.xlu1 %66  ;;  %1627 = vmatmul.mubr.f32.gmra.mxu0 %v292_v43  ;;  %1675 = vmatprep.mubr.msk.f32.mxu1 %vm136_vm0, %v2181_v53  ;;  %v64_v10 = vpop.permute.xlu0 %63  ;;  %v321_v11 = vsub.f32 %v2164_v31, %v2614_v59 }
  0x92   :  { %vm91_vm11 = vcmp.eq.s32.totalorder %v2066_v2, %v67_v4  ;;  %vm90_vm12 = vcmp.eq.s32.totalorder %v2066_v2, %v64_v10  ;;  %1629 = vmatprep.mubr.f32.mxu0 %v302_v55  ;;  %1691 = vmatprep.subr.mxu0 %v1950_v20  ;;  %v331_v32 = vsub.f32 %v2162_v17, %v2613_v61 }
  0x93   :  { %v2210_v40 = vsel %vm91_vm11, 1.0, %v1877_v5  ;;  %v2213_v41 = vsel %vm90_vm12, 1.0, %v1877_v5  ;;  %1692 = vmatpush3.msra.mxu0 %v1950_v20  ;;  %v322_v43 = vand.u32 4294901760, %v321_v11  ;;  %v2617_v18 = vand.u32 4294901760, %v2196_v1  ;;  %1735 = vmatprep.subr.mxu1 %v1937_v16 }
  0x94   :  { %v171_v49 = vsel %vm136_vm0, %v2210_v40, 0  ;;  %v168_v55 = vsel %vm136_vm0, %v2213_v41, 0  ;;  %1676 = vmatmul.mubr.msk.f32.gmra.mxu1 %vm136_vm0, %v2178_v51  ;;  %1693 = vmatprep.subr.mxu0 %v1953_v21  ;;  %v2616_v60 = vand.u32 4294901760, %v2194_v62  ;;  %v332_v59 = vand.u32 4294901760, %v331_v32 }
  0x95   :  { %v2226_v4 = vsub.f32 %v171_v49, %v171_v49  ;;  %v2228_v20 = vsub.f32 %v168_v55, %v168_v55  ;;  %v73_v10 = vpop.permute.xlu1 %72  ;;  %1630 = vmatmul.mubr.f32.gmra.mxu0 %v312_v19  ;;  %1678 = vmatprep.mubr.msk.f32.mxu1 %vm136_vm0, %v2213_v41  ;;  %v70_v11 = vpop.permute.xlu0 %69  ;;  %v341_v61 = vsub.f32 %v2196_v1, %v2617_v18 }
  0x96   :  { %vm93_vm13 = vcmp.eq.s32.totalorder %v2066_v2, %v73_v10  ;;  %vm92_vm14 = vcmp.eq.s32.totalorder %v2066_v2, %v70_v11  ;;  %1632 = vmatprep.mubr.f32.mxu0 %v322_v43  ;;  %1694 = vmatpush3.msra.mxu0 %v1953_v21  ;;  %v351_v19 = vsub.f32 %v2194_v62, %v2616_v60 }
  0x97   :  { %v2242_v49 = vsel %vm93_vm13, 1.0, %v1877_v5  ;;  %v2245_v55 = vsel %vm92_vm14, 1.0, %v1877_v5  ;;  %v342_v13 = vand.u32 4294901760, %v341_v61  ;;  %1695 = vmatprep.subr.mxu0 %v1977_v29  ;;  %v2620_v43 = vand.u32 4294901760, %v2228_v20  ;;  %1736 = vmatpush3.msra.mxu1 %v1937_v16 }
  0x98   :  { %v177_v21 = vsel %vm136_vm0, %v2242_v49, 0  ;;  %v174_v32 = vsel %vm136_vm0, %v2245_v55, 0  ;;  %1679 = vmatmul.mubr.msk.f32.gmra.mxu1 %vm136_vm0, %v2210_v40  ;;  %v2621_v10 = vand.u32 4294901760, %v2226_v4  ;;  %v352_v56 = vand.u32 4294901760, %v351_v19  ;;  %1696 = vmatpush3.msra.mxu0 %v1977_v29 }
  0x99   :  { %v2258_v61 = vsub.f32 %v177_v21, %v177_v21  ;;  %v2260_v11 = vsub.f32 %v174_v32, %v174_v32  ;;  %v79_v60 = vpop.permute.xlu1 %78  ;;  %1633 = vmatmul.mubr.f32.gmra.mxu0 %v332_v59  ;;  %1681 = vmatprep.mubr.msk.f32.mxu1 %vm136_vm0, %v2245_v55  ;;  %v76_v18 = vpop.permute.xlu0 %75  ;;  %v361_v3 = vsub.f32 %v2228_v20, %v2620_v43 }
  0x9a   :  { %vm95_vm15 = vcmp.eq.s32.totalorder %v2066_v2, %v79_v60  ;;  %vm94_vm1 = vcmp.eq.s32.totalorder %v2066_v2, %v76_v18  ;;  %1635 = vmatprep.mubr.f32.mxu0 %v342_v13  ;;  %v371_v59 = vsub.f32 %v2226_v4, %v2621_v10  ;;  %1697 = vmatprep.subr.mxu0 %v1996_v36 }
  0x9b   :  { %v2274_v21 = vsel %vm95_vm15, 1.0, %v1877_v5  ;;  %v2277_v32 = vsel %vm94_vm1, 1.0, %v1877_v5  ;;  %v362_v43 = vand.u32 4294901760, %v361_v3  ;;  %v380_v2 = vand.u32 4294901760, %v2260_v11  ;;  %1737 = vmatprep.subr.mxu1 %v1956_v22  ;;  %1698 = vmatpush3.msra.mxu0 %v1996_v36 }
  0x9c   :  { %v183_v29 = vsel %vm136_vm0, %v2274_v21, 0  ;;  %v180_v13 = vsel %vm136_vm0, %v2277_v32, 0  ;;  %1682 = vmatmul.mubr.msk.f32.gmra.mxu1 %vm136_vm0, %v2242_v49  ;;  %v390_v5 = vand.u32 4294901760, %v2258_v61  ;;  %v372_v19 = vand.u32 4294901760, %v371_v59  ;;  %1699 = vmatprep.subr.mxu0 %v2014_v44 }
  0x9d   :  { %v2290_v18 = vsub.f32 %v183_v29, %v183_v29  ;;  %v2292_v3 = vsub.f32 %v180_v13, %v180_v13  ;;  %1636 = vmatmul.mubr.f32.gmra.mxu0 %v352_v56  ;;  %1684 = vmatprep.mubr.msk.f32.mxu1 %vm136_vm0, %v2277_v32  ;;  %v381_v60 = vsub.f32 %v2260_v11, %v380_v2 }
  0x9e   :  { %1638 = vmatprep.mubr.f32.mxu0 %v362_v43  ;;  %1738 = vmatpush3.msra.mxu1 %v1956_v22  ;;  %v391_v56 = vsub.f32 %v2258_v61, %v390_v5 }
  0x9f   :  { %1739 = vmatprep.subr.mxu1 %v1991_v34  ;;  %v382_v29 = vand.u32 4294901760, %v381_v60  ;;  %v400_v13 = vand.u32 4294901760, %v2292_v3  ;;  %v410_v10 = vand.u32 4294901760, %v2290_v18  ;;  %1700 = vmatpush3.msra.mxu0 %v2014_v44  ;;  %v2622_v44 = vand.u32 4294901760, %v2102_v37 }
  0xa0   :  { %1685 = vmatmul.mubr.msk.f32.gmra.mxu1 %vm136_vm0, %v2274_v21  ;;  %v392_v43 = vand.u32 4294901760, %v391_v56  ;;  %1701 = vmatprep.subr.mxu0 %v2022_v47 }
  0xa1   :  { %1639 = vmatmul.mubr.f32.gmra.mxu0 %v372_v19  ;;  %1740 = vmatpush3.msra.mxu1 %v1991_v34  ;;  %v401_v36 = vsub.f32 %v2292_v3, %v400_v13  ;;  %v411_v60 = vsub.f32 %v2290_v18, %v410_v10 }
  0xa2   :  { %1743 = vmatprep.mubr.f32.mxu1 %v260_v30  ;;  %1641 = vmatprep.mubr.f32.mxu0 %v382_v29 }
  0xa3   :  { %1741 = vmatprep.subr.mxu1 %v1999_v38  ;;  %v402_v59 = vand.u32 4294901760, %v401_v36  ;;  %v412_v30 = vand.u32 4294901760, %v411_v60  ;;  %1702 = vmatpush3.msra.mxu0 %v2022_v47  ;;  %v2624_v47 = vand.u32 4294901760, %v2132_v57 }
  0xa4   :  { %1742 = vmatpush3.msra.mxu1 %v1999_v38  ;;  %1767 = vmatprep.subr.mxu0 %v1962_v24 }
  0xa5   :  { %1744 = vmatmul.mubr.f32.vlgmr.msra.gmra.mxu1 %v270_v50  ;;  %1642 = vmatmul.mubr.f32.gmra.mxu0 %v392_v43  ;;  %v2623_v50 = vand.u32 4294901760, %v2134_v58 }
  0xa6   :  { %1746 = vmatprep.mubr.f32.mxu1 %v280_v35  ;;  %1644 = vmatprep.mubr.f32.mxu0 %v402_v59 }
  0xa7   :  { %1807 = vmatprep.subr.mxu1 %v1914_v7 }
  0xa8   :  { %1808 = vmatpush3.msra.mxu1 %v1914_v7  ;;  %v2625_v7 = vand.u32 4294901760, %v2164_v31 }
  0xa9   :  { %1747 = vmatmul.mubr.f32.gmra.mxu1 %v2622_v44  ;;  %1645 = vmatmul.mubr.f32.gmra.mxu0 %v412_v30 }
  0xaa   :  { %1749 = vmatprep.mubr.f32.mxu1 %v2623_v50  ;;  %1703 = vmatprep.mubr.f32.mxu0 %v2084_v23  ;;  %v2627_v23 = vand.u32 4294901760, %v2196_v1 }
  0xab   :  { %1809 = vmatprep.subr.mxu1 %v1916_v8 }
  0xac   :  { %1810 = vmatpush3.msra.mxu1 %v1916_v8  ;;  %v2626_v8 = vand.u32 4294901760, %v2162_v17 }
  0xad   :  { %1750 = vmatmul.mubr.f32.gmra.mxu1 %v2624_v47  ;;  %1704 = vmatmul.mubr.f32.vlgmr.msra.gmra.mxu0 %v2104_v39 }
  0xae   :  { %1752 = vmatprep.mubr.f32.mxu1 %v2625_v7  ;;  %1768 = vmatpush3.msra.mxu0 %v1962_v24  ;;  %v2628_v24 = vand.u32 4294901760, %v2194_v62 }
  0xaf   :  { %1706 = vmatprep.mubr.f32.mxu0 %v2082_v12  ;;  %1769 = vmatprep.subr.mxu0 %v1965_v25 }
  0xb0   :  { %1770 = vmatpush3.msra.mxu0 %v1965_v25  ;;  %1811 = vmatprep.subr.mxu1 %v1933_v14  ;;  %v2629_v25 = vand.u32 4294901760, %v2228_v20 }
  0xb1   :  { %1753 = vmatmul.mubr.f32.gmra.mxu1 %v2626_v8  ;;  %1707 = vmatmul.mubr.f32.gmra.mxu0 %v2102_v37 }
  0xb2   :  { %1755 = vmatprep.mubr.f32.mxu1 %v2627_v23  ;;  %1709 = vmatprep.mubr.f32.mxu0 %v2134_v58 }
  0xb3   :  { %1771 = vmatprep.subr.mxu0 %v1974_v28  ;;  %1812 = vmatpush3.msra.mxu1 %v1933_v14  ;;  %v2630_v14 = vand.u32 4294901760, %v2226_v4 }
  0xb4   :  { %1772 = vmatpush3.msra.mxu0 %v1974_v28  ;;  %1813 = vmatprep.subr.mxu1 %v1935_v15 }
  0xb5   :  { %1756 = vmatmul.mubr.f32.gmra.mxu1 %v2628_v24  ;;  %1710 = vmatmul.mubr.f32.gmra.mxu0 %v2132_v57 }
  0xb6   :  { %1758 = vmatprep.mubr.f32.mxu1 %v2629_v25  ;;  %1712 = vmatprep.mubr.f32.mxu0 %v2164_v31 }
  0xb7   :  { %1773 = vmatprep.subr.mxu0 %v1988_v33  ;;  %1814 = vmatpush3.msra.mxu1 %v1935_v15 }
  0xb8   :  { %1774 = vmatpush3.msra.mxu0 %v1988_v33  ;;  %1815 = vmatprep.subr.mxu1 %v1937_v16 }
  0xb9   :  { %1759 = vmatmul.mubr.f32.gmra.mxu1 %v2630_v14  ;;  %1713 = vmatmul.mubr.f32.gmra.mxu0 %v2162_v17 }
  0xba   :  { %1761 = vmatprep.mubr.f32.mxu1 %v380_v2  ;;  %1715 = vmatprep.mubr.f32.mxu0 %v2196_v1 }
  0xbb   :  { %1775 = vmatprep.subr.mxu0 %v2008_v42  ;;  %1816 = vmatpush3.msra.mxu1 %v1937_v16 }
  0xbc   :  { %1776 = vmatpush3.msra.mxu0 %v2008_v42  ;;  %1817 = vmatprep.subr.mxu1 %v1956_v22 }
  0xbd   :  { %1762 = vmatmul.mubr.f32.gmra.mxu1 %v390_v5  ;;  %1716 = vmatmul.mubr.f32.gmra.mxu0 %v2194_v62 }
  0xbe   :  { %1764 = vmatprep.mubr.f32.mxu1 %v400_v13  ;;  %1718 = vmatprep.mubr.f32.mxu0 %v2228_v20 }
  0xbf   :  { %1818 = vmatpush3.msra.mxu1 %v1956_v22  ;;  %1777 = vmatprep.subr.mxu0 %v2018_v46 }
  0xc0   :  { %1819 = vmatprep.subr.mxu1 %v1991_v34  ;;  %1778 = vmatpush3.msra.mxu0 %v2018_v46 }
  0xc1   :  { %1765 = vmatmul.mubr.f32.gmra.mxu1 %v410_v10  ;;  %1719 = vmatmul.mubr.f32.gmra.mxu0 %v2226_v4 }
  0xc2   :  { %1820 = vmatpush3.msra.mxu1 %v1991_v34  ;;  %1823 = vmatprep.mubr.msk.f32.mxu1 %vm136_vm0, %v2074_v9 }
  0xc3   :  { %1721 = vmatprep.mubr.f32.mxu0 %v2260_v11  ;;  %1821 = vmatprep.subr.mxu1 %v1999_v38 }
  0xc4   :  { %1822 = vmatpush3.msra.mxu1 %v1999_v38  ;;  %1779 = vmatprep.subr.mxu0 %v2034_v52 }
  0xc5   :  { %1824 = vmatmul.mubr.msk.f32.vlgmr.msra.gmra.mxu1 %vm136_vm0, %v2092_v27  ;;  %1722 = vmatmul.mubr.f32.gmra.mxu0 %v2258_v61 }
  0xc6   :  { %1780 = vmatpush3.msra.mxu0 %v2034_v52  ;;  %1826 = vmatprep.mubr.msk.f32.mxu1 %vm136_vm0, %v2071_v6 }
  0xc7   :  { %1724 = vmatprep.mubr.f32.mxu0 %v2292_v3  ;;  %1781 = vmatprep.subr.mxu0 %v2041_v54 }
  0xc8   :  { %1782 = vmatpush3.msra.mxu0 %v2041_v54 }
  0xc9   :  { %1827 = vmatmul.mubr.msk.f32.gmra.mxu1 %vm136_vm0, %v2089_v26  ;;  %1725 = vmatmul.mubr.f32.gmra.mxu0 %v2290_v18 }
  0xca   :  { %1829 = vmatprep.mubr.msk.f32.mxu1 %vm136_vm0, %v2118_v48  ;;  %1783 = vmatprep.mubr.msk.f32.mxu0 %vm136_vm0, %v2074_v9 }
  0xcd   :  { %1830 = vmatmul.mubr.msk.f32.gmra.mxu1 %vm136_vm0, %v2115_v45  ;;  %1784 = vmatmul.mubr.msk.f32.vlgmr.msra.gmra.mxu0 %vm136_vm0, %v2092_v27 }
  0xce   :  { %1832 = vmatprep.mubr.msk.f32.mxu1 %vm136_vm0, %v2151_v0  ;;  %1786 = vmatprep.mubr.msk.f32.mxu0 %vm136_vm0, %v2071_v6 }
  0xd1   :  { %1833 = vmatmul.mubr.msk.f32.gmra.mxu1 %vm136_vm0, %v2148_v63  ;;  %1787 = vmatmul.mubr.msk.f32.gmra.mxu0 %vm136_vm0, %v2089_v26 }
  0xd2   :  { %1835 = vmatprep.mubr.msk.f32.mxu1 %vm136_vm0, %v2181_v53  ;;  %1789 = vmatprep.mubr.msk.f32.mxu0 %vm136_vm0, %v2118_v48 }
  0xd5   :  { %1836 = vmatmul.mubr.msk.f32.gmra.mxu1 %vm136_vm0, %v2178_v51  ;;  %1790 = vmatmul.mubr.msk.f32.gmra.mxu0 %vm136_vm0, %v2115_v45 }
  0xd6   :  { %1838 = vmatprep.mubr.msk.f32.mxu1 %vm136_vm0, %v2213_v41  ;;  %1792 = vmatprep.mubr.msk.f32.mxu0 %vm136_vm0, %v2151_v0 }
  0xd9   :  { %1839 = vmatmul.mubr.msk.f32.gmra.mxu1 %vm136_vm0, %v2210_v40  ;;  %1793 = vmatmul.mubr.msk.f32.gmra.mxu0 %vm136_vm0, %v2148_v63 }
  0xda   :  { %1841 = vmatprep.mubr.msk.f32.mxu1 %vm136_vm0, %v2245_v55  ;;  %1795 = vmatprep.mubr.msk.f32.mxu0 %vm136_vm0, %v2181_v53 }
  0xdd   :  { %1842 = vmatmul.mubr.msk.f32.gmra.mxu1 %vm136_vm0, %v2242_v49  ;;  %1796 = vmatmul.mubr.msk.f32.gmra.mxu0 %vm136_vm0, %v2178_v51 }
  0xde   :  { %1844 = vmatprep.mubr.msk.f32.mxu1 %vm136_vm0, %v2277_v32  ;;  %1798 = vmatprep.mubr.msk.f32.mxu0 %vm136_vm0, %v2213_v41 }
  0xe1   :  { %1845 = vmatmul.mubr.msk.f32.gmra.mxu1 %vm136_vm0, %v2274_v21  ;;  %1799 = vmatmul.mubr.msk.f32.gmra.mxu0 %vm136_vm0, %v2210_v40 }
  0xe2   :  { %1801 = vmatprep.mubr.msk.f32.mxu0 %vm136_vm0, %v2245_v55 }
  0xe5   :  { %1802 = vmatmul.mubr.msk.f32.gmra.mxu0 %vm136_vm0, %v2242_v49 }
  0xe6   :  { %1804 = vmatprep.mubr.msk.f32.mxu0 %vm136_vm0, %v2277_v32 }
  0xe9   :  { %1805 = vmatmul.mubr.msk.f32.gmra.mxu0 %vm136_vm0, %v2274_v21 }
 0x144   :  { %v1665_v15 = vpop.f32.mrf.mxu1 }
 0x146   :  { %v2466_v16 = vpop.f32.mrf.mxu1 }
 0x148   :  { %v2468_v22 = vpop.f32.mrf.mxu1 }
 0x14a   :  { %v2470_v28 = vpop.f32.mrf.mxu1 }
 0x14c   :  { %v2472_v33 = vpop.f32.mrf.mxu1 }
 0x14d   :  { %v1625_v34 = vpop.f32.mrf.mxu0 }
 0x14e   :  { %v2474_v38 = vpop.f32.mrf.mxu1  ;;  %v532_v25 = vadd.f32 %v1665_v15, %v1625_v34 }
 0x14f   :  { %v264_v42 = vpop.f32.mrf.mxu0 }
 0x150   :  { %v2476_v46 = vpop.f32.mrf.mxu1 }
 0x151   :  { %v1628_v52 = vpop.f32.mrf.mxu0 }
 0x152   :  { %v2478_v54 = vpop.f32.mrf.mxu1 }
 0x153   :  { %v284_v6 = vpop.f32.mrf.mxu0 }
 0x154   :  { %v2480_v9 = vpop.f32.mrf.mxu1 }
 0x155   :  { %v2482_v12 = vpop.f32.mrf.mxu0 }
 0x156   :  { %v2484_v26 = vpop.f32.mrf.mxu1 }
 0x157   :  { %v2486_v27 = vpop.f32.mrf.mxu0 }
 0x158   :  { %v2488_v35 = vpop.f32.mrf.mxu1 }
 0x159   :  { %v2490_v37 = vpop.f32.mrf.mxu0 }
 0x15a   :  { %v2492_v39 = vpop.f32.mrf.mxu1 }
 0x15b   :  { %v2494_v45 = vpop.f32.mrf.mxu0 }
 0x15c   :  { %v2496_v48 = vpop.f32.mrf.mxu1 }
 0x15d   :  { %v2498_v57 = vpop.f32.mrf.mxu0 }
 0x15e   :  { %v2500_v58 = vpop.f32.mrf.mxu1 }
 0x15f   :  { %2631 = vst [vmem:[#allocation5_spill] sm:$0xff] %v2500_v58  ;;  %v2502_v63 = vpop.f32.mrf.mxu0 }
 0x160   :  { %v2504_v0 = vpop.f32.mrf.mxu1 }
 0x161   :  { %2632 = vst [vmem:[#allocation6_spill] sm:$0xff] %v2504_v0  ;;  %v2506_v17 = vpop.f32.mrf.mxu0 }
 0x162   :  { %v2508_v31 = vpop.f32.mrf.mxu1 }
 0x163   :  { %2633 = vst [vmem:[#allocation7_spill] sm:$0xff] %v2508_v31  ;;  %v2510_v51 = vpop.f32.mrf.mxu0  ;;  %v526_v31 = vadd.f32 %v2466_v16, %v264_v42 }
 0x165   :  { %v1745_v53 = vpop.f32.mrf.mxu1  ;;  %v2512_v62 = vpop.f32.mrf.mxu0 }
 0x167   :  { %v889_v1 = vpop.f32.mrf.mxu1  ;;  %v2514_v40 = vpop.f32.mrf.mxu0 }
 0x169   :  { %v1748_v41 = vpop.f32.mrf.mxu1  ;;  %v2516_v4 = vpop.f32.mrf.mxu0 }
 0x16a   :  { %2634 = vst [vmem:[#allocation8_spill] sm:$0xff] %v2516_v4 }
 0x16b   :  { %v905_v20 = vpop.f32.mrf.mxu1  ;;  %v2518_v49 = vpop.f32.mrf.mxu0 }
 0x16c   :  { %2635 = vst [vmem:[#allocation9_spill] sm:$0xff] %v2518_v49 }
 0x16d   :  { %v2520_v55 = vpop.f32.mrf.mxu1  ;;  %v1705_v10 = vpop.f32.mrf.mxu0 }
 0x16f   :  { %v2522_v61 = vpop.f32.mrf.mxu1  ;;  %v703_v11 = vpop.f32.mrf.mxu0 }
 0x170   :  { %v704_v0 = vadd.f32 %v703_v11, %v526_v31 }
 0x171   :  { %v2524_v21 = vpop.f32.mrf.mxu1  ;;  %v1708_v32 = vpop.f32.mrf.mxu0 }
 0x173   :  { %v2526_v2 = vpop.f32.mrf.mxu1  ;;  %v717_v5 = vpop.f32.mrf.mxu0 }
 0x175   :  { %v2528_v18 = vpop.f32.mrf.mxu1  ;;  %v1711_v3 = vpop.f32.mrf.mxu0 }
 0x177   :  { %v2530_v19 = vpop.f32.mrf.mxu1  ;;  %v731_v29 = vpop.f32.mrf.mxu0 }
 0x179   :  { %v2532_v56 = vpop.f32.mrf.mxu1  ;;  %v1714_v13 = vpop.f32.mrf.mxu0 }
 0x17a   :  { %2636 = vst [vmem:[#allocation10_spill] sm:$0xff] %v2532_v56  ;;  %v538_v56 = vadd.f32 %v2470_v28, %v284_v6  ;;  %v568_v28 = vadd.f32 %v2476_v46, %v2490_v37  ;;  %v580_v46 = vadd.f32 %v2480_v9, %v2498_v57  ;;  %v592_v57 = vadd.f32 %v2488_v35, %v2506_v17 }
 0x17b   :  { %v2534_v36 = vpop.f32.mrf.mxu1  ;;  %v745_v43 = vpop.f32.mrf.mxu0  ;;  %v604_v17 = vadd.f32 %v2496_v48, %v2512_v62  ;;  %v2649_v62 = vld [vmem:[#allocation8_spill] sm:$0xff] }
 0x17c   :  { %2637 = vst [vmem:[#allocation11_spill] sm:$0xff] %v2534_v36  ;;  %v718_v16 = vadd.f32 %v717_v5, %v538_v56 }
 0x17d   :  { %v2536_v59 = vpop.f32.mrf.mxu1  ;;  %v2538_v60 = vpop.f32.mrf.mxu0 }
 0x17e   :  { %2638 = vst [vmem:[#allocation12_spill] sm:$0xff] %v2536_v59  ;;  %v906_v5 = vadd.f32 %v905_v20, %v718_v16 }
 0x17f   :  { %v2540_v30 = vpop.f32.mrf.mxu1  ;;  %v2542_v44 = vpop.f32.mrf.mxu0 }
 0x180   :  { %2639 = vst [vmem:[#allocation13_spill] sm:$0xff] %v2540_v30  ;;  %v711_v30 = vadd.f32 %v1705_v10, %v532_v25  ;;  %v890_v10 = vadd.f32 %v889_v1, %v704_v0  ;;  %v550_v25 = vadd.f32 %v2474_v38, %v2486_v27  ;;  %v562_v0 = vadd.f32 %v2478_v54, %v2494_v45 }
 0x181   :  { %v2544_v50 = vpop.f32.mrf.mxu1  ;;  %v2546_v47 = vpop.f32.mrf.mxu0  ;;  %v753_v1 = vadd.f32 %v1714_v13, %v568_v28  ;;  %v574_v54 = vadd.f32 %v2484_v26, %v2502_v63  ;;  %v586_v63 = vadd.f32 %v2492_v39, %v2510_v51  ;;  %v2646_v51 = vld [vmem:[#allocation5_spill] sm:$0xff] }
 0x182   :  { %2640 = vst [vmem:[#allocation14_spill] sm:$0xff] %v2544_v50  ;;  %v544_v50 = vadd.f32 %v2468_v22, %v1628_v52 }
 0x183   :  { %v2548_v7 = vpop.f32.mrf.mxu1  ;;  %v2550_v8 = vpop.f32.mrf.mxu0  ;;  %v946_v9 = vadd.f32 %v2524_v21, %v753_v1 }
 0x184   :  { %2641 = vst [vmem:[#allocation15_spill] sm:$0xff] %v2548_v7  ;;  %v725_v58 = vadd.f32 %v1708_v32, %v544_v50  ;;  %v732_v32 = vadd.f32 %v731_v29, %v550_v25  ;;  %v746_v29 = vadd.f32 %v745_v43, %v562_v0  ;;  %v760_v50 = vadd.f32 %v2542_v44, %v574_v54 }
 0x185   :  { %v1825_v23 = vpop.f32.mrf.mxu1  ;;  %v2552_v24 = vpop.f32.mrf.mxu0 }
 0x186   :  { %2642 = vst [vmem:[#allocation16_spill] sm:$0xff] %v2552_v24  ;;  %v898_v24 = vadd.f32 %v1745_v53, %v711_v30  ;;  %v938_v26 = vadd.f32 %v2526_v2, %v746_v29  ;;  %v954_v39 = vadd.f32 %v2530_v19, %v760_v50 }
 0x187   :  { %v1273_v14 = vpop.f32.mrf.mxu1  ;;  %v2554_v59 = vpop.f32.mrf.mxu0 }
 0x188   :  { %2643 = vst [vmem:[#allocation17_spill] sm:$0xff] %v2554_v59  ;;  %v556_v59 = vadd.f32 %v2472_v33, %v2482_v12 }
 0x189   :  { %v1828_v49 = vpop.f32.mrf.mxu1  ;;  %v2557_v36 = vpop.f32.mrf.mxu0 }
 0x18a   :  { %2644 = vst [vmem:[#allocation18_spill] sm:$0xff] %v2557_v36  ;;  %v739_v31 = vadd.f32 %v1711_v3, %v556_v59  ;;  %v914_v36 = vadd.f32 %v1748_v41, %v725_v58  ;;  %v922_v59 = vadd.f32 %v2522_v61, %v732_v32  ;;  %v2652_v32 = vld [vmem:[#allocation11_spill] sm:$0xff] }
 0x18b   :  { %v1285_v4 = vpop.f32.mrf.mxu1  ;;  %v2560_v7 = vpop.f32.mrf.mxu0  ;;  %v2660_v50 = vld [vmem:[#allocation15_spill] sm:$0xff] }
 0x18c   :  { %2645 = vst [vmem:[#allocation19_spill] sm:$0xff] %v2560_v7  ;;  %v930_v58 = vadd.f32 %v2520_v55, %v739_v31 }
 0x18d   :  { %v1831_v15 = vpop.f32.mrf.mxu1  ;;  %v1785_v34 = vpop.f32.mrf.mxu0 }
 0x18e   :  { %v1111_v42 = vadd.f32 %v1785_v34, %v898_v24 }
 0x18f   :  { %v1297_v22 = vpop.f32.mrf.mxu1  ;;  %v1104_v52 = vpop.f32.mrf.mxu0  ;;  %v2651_v28 = vld [vmem:[#allocation17_spill] sm:$0xff] }
 0x190   :  { %v1280_v11 = vadd.f32 %v1825_v23, %v1111_v42  ;;  %v1105_v7 = vadd.f32 %v1104_v52, %v890_v10  ;;  %v781_v23 = vadd.f32 %v2546_v47, %v592_v57  ;;  %v598_v47 = vadd.f32 %v2646_v51, %v2514_v40  ;;  %v2647_v42 = vld [vmem:[#allocation16_spill] sm:$0xff]  ;;  %v2650_v52 = vld [vmem:[#allocation6_spill] sm:$0xff] }
 0x191   :  { %v1834_v6 = vpop.f32.mrf.mxu1  ;;  %v1788_v53 = vpop.f32.mrf.mxu0  ;;  %v795_v10 = vadd.f32 %v2647_v42, %v604_v17  ;;  %v616_v31 = vadd.f32 %v2650_v52, %v2649_v62 }
 0x192   :  { %1368 = vst [vmem:[#allocation2 + $0x8] sm:$0xff] %v1280_v11  ;;  %v1274_v33 = vadd.f32 %v1273_v14, %v1105_v7  ;;  %v1123_v12 = vadd.f32 %v1788_v53, %v914_v36 }
 0x193   :  { %v1309_v38 = vpop.f32.mrf.mxu1  ;;  %v1116_v27 = vpop.f32.mrf.mxu0 }
 0x194   :  { %1367 = vst [vmem:[#allocation2] sm:$0xff] %v1274_v33  ;;  %v1292_v3 = vadd.f32 %v1828_v49, %v1123_v12  ;;  %v1117_v56 = vadd.f32 %v1116_v27, %v906_v5  ;;  %v767_v49 = vadd.f32 %v2538_v60, %v580_v46  ;;  %v2653_v33 = vld [vmem:[#allocation9_spill] sm:$0xff]  ;;  %v2654_v12 = vld [vmem:[#allocation7_spill] sm:$0xff] }
 0x195   :  { %v1837_v37 = vpop.f32.mrf.mxu1  ;;  %v1791_v41 = vpop.f32.mrf.mxu0  ;;  %v610_v5 = vadd.f32 %v2654_v12, %v2653_v33 }
 0x196   :  { %1370 = vst [vmem:[#allocation2 + $0x18] sm:$0xff] %v1292_v3  ;;  %v1286_v36 = vadd.f32 %v1285_v4, %v1117_v56  ;;  %v1135_v20 = vadd.f32 %v1791_v41, %v930_v58  ;;  %v962_v35 = vadd.f32 %v2528_v18, %v767_v49  ;;  %v2656_v56 = vld [vmem:[#allocation12_spill] sm:$0xff]  ;;  %v2657_v41 = vld [vmem:[#allocation19_spill] sm:$0xff] }
 0x197   :  { %v1321_v45 = vpop.f32.mrf.mxu1  ;;  %v1128_v13 = vpop.f32.mrf.mxu0  ;;  %v994_v58 = vadd.f32 %v2656_v56, %v795_v10  ;;  %v802_v29 = vadd.f32 %v2657_v41, %v610_v5 }
 0x198   :  { %1369 = vst [vmem:[#allocation2 + $0x10] sm:$0xff] %v1286_v36  ;;  %v1304_v55 = vadd.f32 %v1831_v15, %v1135_v20  ;;  %v1129_v30 = vadd.f32 %v1128_v13, %v922_v59  ;;  %v774_v15 = vadd.f32 %v2550_v8, %v586_v63  ;;  %v2658_v59 = vld [vmem:[#allocation13_spill] sm:$0xff] }
 0x199   :  { %v1840_v43 = vpop.f32.mrf.mxu1  ;;  %v1794_v4 = vpop.f32.mrf.mxu0 }
 0x19a   :  { %1372 = vst [vmem:[#allocation2 + $0x28] sm:$0xff] %v1304_v55  ;;  %v1298_v61 = vadd.f32 %v1297_v22, %v1129_v30  ;;  %v1147_v7 = vadd.f32 %v1794_v4, %v946_v9  ;;  %v2648_v22 = vld [vmem:[#allocation10_spill] sm:$0xff]  ;;  %v970_v40 = vadd.f32 %v2652_v32, %v774_v15 }
 0x19b   :  { %v1140_v60 = vpop.f32.mrf.mxu0  ;;  %v1333_v44 = vpop.f32.mrf.mxu1  ;;  %v978_v48 = vadd.f32 %v2648_v22, %v781_v23  ;;  %v2659_v55 = vld [vmem:[#allocation14_spill] sm:$0xff] }
 0x19c   :  { %1371 = vst [vmem:[#allocation2 + $0x20] sm:$0xff] %v1298_v61  ;;  %v1316_v21 = vadd.f32 %v1834_v6, %v1147_v7  ;;  %v1141_v24 = vadd.f32 %v1140_v60, %v938_v26  ;;  %v788_v6 = vadd.f32 %v2651_v28, %v598_v47  ;;  %v1002_v61 = vadd.f32 %v2660_v50, %v802_v29 }
 0x19d   :  { %v1797_v14 = vpop.f32.mrf.mxu0  ;;  %v1843_v8 = vpop.f32.mrf.mxu1 }
 0x19e   :  { %1374 = vst [vmem:[#allocation2 + $0x38] sm:$0xff] %v1316_v21  ;;  %v1310_v2 = vadd.f32 %v1309_v38, %v1141_v24  ;;  %v1159_v34 = vadd.f32 %v1797_v14, %v962_v35  ;;  %v2655_v38 = vld [vmem:[#allocation18_spill] sm:$0xff]  ;;  %v986_v54 = vadd.f32 %v2658_v59, %v788_v6 }
 0x19f   :  { %v1152_v16 = vpop.f32.mrf.mxu0  ;;  %v809_v27 = vadd.f32 %v2655_v38, %v616_v31  ;;  %v1345_v46 = vpop.f32.mrf.mxu1 }
 0x1a0   :  { %1373 = vst [vmem:[#allocation2 + $0x30] sm:$0xff] %v1310_v2  ;;  %v1328_v18 = vadd.f32 %v1837_v37, %v1159_v34  ;;  %v1153_v25 = vadd.f32 %v1152_v16, %v954_v39 }
 0x1a1   :  { %v1800_v11 = vpop.f32.mrf.mxu0  ;;  %v1010_v30 = vadd.f32 %v2659_v55, %v809_v27  ;;  %v1846_v9 = vpop.f32.mrf.mxu1 }
 0x1a2   :  { %1376 = vst [vmem:[#allocation2 + $0x48] sm:$0xff] %v1328_v18  ;;  %v1322_v19 = vadd.f32 %v1321_v45, %v1153_v25  ;;  %v1171_v53 = vadd.f32 %v1800_v11, %v978_v48 }
 0x1a3   :  { %v1164_v0 = vpop.f32.mrf.mxu0  ;;  %v1357_v60 = vpop.f32.mrf.mxu1 }
 0x1a4   :  { %1375 = vst [vmem:[#allocation2 + $0x40] sm:$0xff] %v1322_v19  ;;  %v1340_v1 = vadd.f32 %v1840_v43, %v1171_v53  ;;  %v1165_v3 = vadd.f32 %v1164_v0, %v970_v40 }
 0x1a5   :  { %v1803_v37 = vpop.f32.mrf.mxu0 }
 0x1a6   :  { %1378 = vst [vmem:[#allocation2 + $0x58] sm:$0xff] %v1340_v1  ;;  %v1334_v36 = vadd.f32 %v1333_v44, %v1165_v3  ;;  %v1183_v20 = vadd.f32 %v1803_v37, %v994_v58 }
 0x1a7   :  { %v1176_v45 = vpop.f32.mrf.mxu0 }
 0x1a8   :  { %1377 = vst [vmem:[#allocation2 + $0x50] sm:$0xff] %v1334_v36  ;;  %v1352_v13 = vadd.f32 %v1843_v8, %v1183_v20  ;;  %v1177_v49 = vadd.f32 %v1176_v45, %v986_v54 }
 0x1a9   :  { %v1806_v57 = vpop.f32.mrf.mxu0 }
 0x1aa   :  { %1380 = vst [vmem:[#allocation2 + $0x68] sm:$0xff] %v1352_v13  ;;  %v1346_v43 = vadd.f32 %v1345_v46, %v1177_v49  ;;  %v1195_v4 = vadd.f32 %v1806_v57, %v1010_v30 }
 0x1ab   :  { %v1188_v7 = vpop.f32.mrf.mxu0 }
 0x1ac   :  { %1379 = vst [vmem:[#allocation2 + $0x60] sm:$0xff] %v1346_v43  ;;  %v1364_v26 = vadd.f32 %v1846_v9, %v1195_v4  ;;  %v1189_v63 = vadd.f32 %v1188_v7, %v1002_v61 }
 0x1ae   :  { %1382 = vst [vmem:[#allocation2 + $0x78] sm:$0xff] %v1364_v26  ;;  %v1358_v23 = vadd.f32 %v1357_v60, %v1189_v63 }
 0x1b0   :  { %1381 = vst [vmem:[#allocation2 + $0x70] sm:$0xff] %v1358_v23 }
 0x1b1   :  { %1865 = shalt.err (!%p1862_p4)
}
 0x1b2   :  { %s1879_s30 = smov 128   ;;  %s1880_s3 = smov 8  }
 0x1b3   :  { %1394 = dma.vmem_to_hbm [thread:$0]  %s1389_s28, 2048, %s2612_s2, [#allocation3], %s1879_s30, %s1879_s30, %s1880_s3  }
 0x1b4   :  { %1874 = dma.done.wait [#allocation3], 2048  }
 0x1b5   :  { %1875 = vsyncadd [#allocation3], 4294965248 }
 0x1b6   :  { %1398 = vsyncpa [#allocation3], 1 }

</bundles_post_ra>
